<compile_context>
chip_gen: v6e
topology: v6e:2x2x1
jax: 0.10.0
libtpu: 0.0.40
codegen_flags: <defaults>
</compile_context>

<pallas_src>
import functools

import jax
import jax.numpy as jnp
from jax.experimental import pallas as pl
from jax.experimental.pallas import tpu as pltpu


def _round_up(x, m):
    return (x + m - 1) // m * m


def _const_spec(block_shape):
    """BlockSpec for a grid-invariant (VMEM-resident) operand, single-buffered."""
    index_map = lambda i: (0,) * len(block_shape)
    if hasattr(pl, "Buffered"):
        try:
            return pl.BlockSpec(block_shape, index_map,
                                pipeline_mode=pl.Buffered(1))
        except TypeError:
            pass
    return pl.BlockSpec(block_shape, index_map)


def make_encoder_kernel(n_hidden, compute_dtype):
    """Fused encoder: n_hidden x (matmul+bias+ReLU) + fused mu|logvar matmul."""
    f32 = jnp.float32
    # Faithful f32 matmuls when requested; default (fast) path for bf16.
    precision = jax.lax.Precision.HIGHEST if compute_dtype == f32 else None

    def kernel(x_ref, *refs):
        # refs layout: [W_1, b_1, ..., W_n, b_n, W_heads, b_heads, out_ref]
        out_ref = refs[-1]
        h = x_ref[...]
        if h.dtype != compute_dtype:
            h = h.astype(compute_dtype)

        idx = 0
        for _ in range(n_hidden):
            w = refs[idx][...]          # already in compute_dtype (host-cast)
            b = refs[idx + 1][...]      # f32
            idx += 2
            h = jnp.dot(h, w, preferred_element_type=f32,
                        precision=precision) + b
            h = jnp.maximum(h, 0.0)     # ReLU in f32 on the VPU
            if compute_dtype != f32:
                h = h.astype(compute_dtype)

        w_heads = refs[idx][...]
        b_heads = refs[idx + 1][...]
        out_ref[...] = (jnp.dot(h, w_heads, preferred_element_type=f32,
                                precision=precision)
                        + b_heads).astype(out_ref.dtype)

    return kernel


# --------------------------------------------------------------------------
# Parameter init (mimics nn.Linear's U(-1/sqrt(in), 1/sqrt(in)))
# --------------------------------------------------------------------------
def init_linear_params(key, in_dim, out_dim):
    kw, kb = jax.random.split(key)
    bound = 1.0 / jnp.sqrt(jnp.float32(in_dim))
    w = jax.random.uniform(kw, (in_dim, out_dim), jnp.float32, -bound, bound)
    b = jax.random.uniform(kb, (1, out_dim), jnp.float32, -bound, bound)
    return w, b


def init_encoder_params(key, input_dim, hidden_dims, latent_dim):
    params = []
    in_dim = input_dim
    for h_dim in hidden_dims:
        key, sub = jax.random.split(key)
        params.append(init_linear_params(sub, in_dim, h_dim))
        in_dim = h_dim
    key, sub = jax.random.split(key)
    mu_params = init_linear_params(sub, in_dim, latent_dim)
    key, sub = jax.random.split(key)
    lv_params = init_linear_params(sub, in_dim, latent_dim)
    return params, mu_params, lv_params


# --------------------------------------------------------------------------
# One-time parameter prep: pad to 128 lanes, fuse mu|logvar, optional bf16.
# Zero padding is mathematically inert (zero weight cols/rows, zero bias ->
# zero activations in the padded lanes), and is sliced off in the wrapper.
# --------------------------------------------------------------------------
def prep_encoder_params(hidden_params, mu_params, lv_params,
                        compute_dtype=jnp.bfloat16):
    flat = []
    prev_dim = hidden_params[0][0].shape[0]   # input_dim
    prev_pad = prev_dim                       # x feature dim is NOT padded
    for w, b in hidden_params:
        d = w.shape[1]
        dp = _round_up(d, 128)
        w_p = (jnp.zeros((prev_pad, dp), jnp.float32)
               .at[:prev_dim, :d].set(w).astype(compute_dtype))
        b_p = jnp.zeros((1, dp), jnp.float32).at[:, :d].set(b.reshape(1, -1))
        flat += [w_p, b_p]
        prev_dim, prev_pad = d, dp

    w_heads = jnp.concatenate([mu_params[0], lv_params[0]], axis=1)
    b_heads = jnp.concatenate([mu_params[1].reshape(1, -1),
                               lv_params[1].reshape(1, -1)], axis=1)
    head_dim = w_heads.shape[1]
    head_pad = _round_up(head_dim, 128)
    w_h_p = (jnp.zeros((prev_pad, head_pad), jnp.float32)
             .at[:prev_dim, :head_dim].set(w_heads).astype(compute_dtype))
    b_h_p = jnp.zeros((1, head_pad), jnp.float32).at[:, :head_dim].set(b_heads)
    flat += [w_h_p, b_h_p]
    return tuple(jax.device_put(a) for a in flat)


# --------------------------------------------------------------------------
# Jitted forward: only the Pallas kernel (params are pre-padded / pre-fused).
# --------------------------------------------------------------------------
@functools.partial(jax.jit, static_argnames=("latent_dim",))
def encoder_forward(x, params, latent_dim):
    batch, input_dim = x.shape
    n_hidden = len(params) // 2 - 1
    compute_dtype = params[0].dtype                  # host-cast weight dtype
    head_pad = params[-2].shape[1]
    out_dtype = jnp.float32 if compute_dtype == jnp.float32 else compute_dtype

    # Batch tile: >= 2 grid steps when possible (v7x dual-TC), up to 1024 rows.
    tb = min(1024, max(8, _round_up(-(-batch // 2), 8)))
    grid = (pl.cdiv(batch, tb),)

    in_specs = [pl.BlockSpec((tb, input_dim), lambda i: (i, 0))]
    in_specs += [_const_spec(p.shape) for p in params]
    out_spec = pl.BlockSpec((tb, head_pad), lambda i: (i, 0))

    # ----- cost estimate & VMEM budget -----------------------------------
    weight_list = params[0::2]
    flops = 2 * batch * sum(int(w.shape[0]) * int(w.shape[1])
                            for w in weight_list)
    param_bytes = sum(int(p.size) * p.dtype.itemsize for p in params)
    bytes_accessed = (batch * input_dim * x.dtype.itemsize
                      + batch * head_pad * jnp.dtype(out_dtype).itemsize
                      + param_bytes)
    cost = pl.CostEstimate(flops=flops, transcendentals=0,
                           bytes_accessed=bytes_accessed)

    max_dim = max([input_dim] + [int(w.shape[1]) for w in weight_list])
    tile_bytes = 2 * tb * (input_dim * x.dtype.itemsize
                           + head_pad * jnp.dtype(out_dtype).itemsize)
    act_bytes = 4 * tb * max_dim * 4          # headroom for activation temps
    vmem_bytes = int(min(max(param_bytes + tile_bytes + act_bytes, 16 << 20),
                         48 << 20))

    out = pl.pallas_call(
        make_encoder_kernel(n_hidden, compute_dtype),
        out_shape=jax.ShapeDtypeStruct((batch, head_pad), out_dtype),
        grid=grid,
        in_specs=in_specs,
        out_specs=out_spec,
        compiler_params=pltpu.CompilerParams(
            dimension_semantics=("parallel",),
            vmem_limit_bytes=vmem_bytes),
        cost_estimate=cost,
    )(x, *params)

    mu = out[:, :latent_dim].astype(jnp.float32)
    logvar = out[:, latent_dim:2 * latent_dim].astype(jnp.float32)
    return mu, logvar


def reference_forward(x, hidden_params, mu_params, lv_params):
    h = x
    for w, b in hidden_params:
        h = jnp.maximum(h @ w + b, 0.0)
    mu = h @ mu_params[0] + mu_params[1]
    logvar = h @ lv_params[0] + lv_params[1]
    return mu, logvar


if __name__ == "__main__":
    # Small, module-consistent shapes: (batch, input_dim) -> (batch, latent_dim)
    batch = 8
    input_dim = 16
    hidden_dims = [32, 32]
    latent_dim = 8

    key = jax.random.PRNGKey(0)
    key, xkey = jax.random.split(key)
    x = jax.random.normal(xkey, (batch, input_dim), jnp.float32)

    hidden_params, mu_params, lv_params = init_encoder_params(
        key, input_dim, hidden_dims, latent_dim)

    mu_ref, lv_ref = reference_forward(x, hidden_params, mu_params, lv_params)

    # f32 path (faithful to the PyTorch module; precision=HIGHEST on the dots)
    prep_f32 = prep_encoder_params(hidden_params, mu_params, lv_params,
                                   compute_dtype=jnp.float32)
    mu, logvar = encoder_forward(x, prep_f32, latent_dim=latent_dim)
    jax.block_until_ready((mu, logvar))
    assert mu.shape == (batch, latent_dim) and logvar.shape == (batch, latent_dim)
    assert jnp.allclose(mu, mu_ref, atol=1e-5, rtol=1e-5)
    assert jnp.allclose(logvar, lv_ref, atol=1e-5, rtol=1e-5)

    # bf16 weight path (recommended default on v6e/v7x); f32 MXU accumulation.
    prep_bf16 = prep_encoder_params(hidden_params, mu_params, lv_params,
                                    compute_dtype=jnp.bfloat16)
    mu_bf, lv_bf = encoder_forward(x, prep_bf16, latent_dim=latent_dim)
    jax.block_until_ready((mu_bf, lv_bf))
    assert jnp.allclose(mu_bf, mu_ref, atol=1e-1, rtol=1e-1)
    assert jnp.allclose(lv_bf, lv_ref, atol=1e-1, rtol=1e-1)

    print("KERNEL_OK")
</pallas_src>

<mosaic_0001>
module attributes {stable_mosaic.version = 11 : i64} {
  func.func @kernel(%arg0: i32, %arg1: memref<8x16xf32, #tpu.memory_space<vmem>>, %arg2: memref<16x128xf32, #tpu.memory_space<vmem>>, %arg3: memref<1x128xf32, #tpu.memory_space<vmem>>, %arg4: memref<128x128xf32, #tpu.memory_space<vmem>>, %arg5: memref<1x128xf32, #tpu.memory_space<vmem>>, %arg6: memref<128x128xf32, #tpu.memory_space<vmem>>, %arg7: memref<1x128xf32, #tpu.memory_space<vmem>>, %arg8: memref<8x128xf32, #tpu.memory_space<vmem>>) attributes {dimension_semantics = [#tpu.dimension_semantics<parallel>], iteration_bounds = array<i64: 1>, scalar_prefetch = 0 : i64, scratch_operands = 0 : i64, tpu.core_type = #tpu.core_type<tc>, window_params = [{transform_indices = @transform_0, window_bounds = array<i64: 8, 16>}, {pipeline_mode = #tpu.pipeline_mode<synchronous>, transform_indices = @transform_1, window_bounds = array<i64: 16, 128>}, {pipeline_mode = #tpu.pipeline_mode<synchronous>, transform_indices = @transform_2, window_bounds = array<i64: 1, 128>}, {pipeline_mode = #tpu.pipeline_mode<synchronous>, transform_indices = @transform_3, window_bounds = array<i64: 128, 128>}, {pipeline_mode = #tpu.pipeline_mode<synchronous>, transform_indices = @transform_4, window_bounds = array<i64: 1, 128>}, {pipeline_mode = #tpu.pipeline_mode<synchronous>, transform_indices = @transform_5, window_bounds = array<i64: 128, 128>}, {pipeline_mode = #tpu.pipeline_mode<synchronous>, transform_indices = @transform_6, window_bounds = array<i64: 1, 128>}, {transform_indices = @transform_7, window_bounds = array<i64: 8, 128>}]} {
    %c0 = arith.constant 0 : index
    %c0_0 = arith.constant 0 : index
    %0 = vector.load %arg1[%c0, %c0_0] : memref<8x16xf32, #tpu.memory_space<vmem>>, vector<8x16xf32>
    %c0_1 = arith.constant 0 : index
    %c0_2 = arith.constant 0 : index
    %1 = vector.load %arg2[%c0_1, %c0_2] : memref<16x128xf32, #tpu.memory_space<vmem>>, vector<16x128xf32>
    %c0_3 = arith.constant 0 : index
    %c0_4 = arith.constant 0 : index
    %2 = vector.load %arg3[%c0_3, %c0_4] : memref<1x128xf32, #tpu.memory_space<vmem>>, vector<1x128xf32>
    %cst = arith.constant dense<0.000000e+00> : vector<8x128xf32>
    %3 = tpu.matmul %0, %1, %cst {dimension_numbers = #tpu.dot_dimension_numbers<[1], [0], [0], [1], [0, 0, 1, 1], [], []>, precision = #tpu.contract_precision<fp32>} : vector<8x16xf32>, vector<16x128xf32>, vector<8x128xf32> -> vector<8x128xf32>
    %4 = vector.broadcast %2 : vector<1x128xf32> to vector<8x128xf32>
    %5 = arith.addf %3, %4 : vector<8x128xf32>
    %cst_5 = arith.constant 0.000000e+00 : f32
    %6 = vector.broadcast %cst_5 : f32 to vector<8x128xf32>
    %7 = arith.maximumf %5, %6 : vector<8x128xf32>
    %c0_6 = arith.constant 0 : index
    %c0_7 = arith.constant 0 : index
    %8 = vector.load %arg4[%c0_6, %c0_7] : memref<128x128xf32, #tpu.memory_space<vmem>>, vector<128x128xf32>
    %c0_8 = arith.constant 0 : index
    %c0_9 = arith.constant 0 : index
    %9 = vector.load %arg5[%c0_8, %c0_9] : memref<1x128xf32, #tpu.memory_space<vmem>>, vector<1x128xf32>
    %cst_10 = arith.constant dense<0.000000e+00> : vector<8x128xf32>
    %10 = tpu.matmul %7, %8, %cst_10 {dimension_numbers = #tpu.dot_dimension_numbers<[1], [0], [0], [1], [0, 0, 1, 1], [], []>, precision = #tpu.contract_precision<fp32>} : vector<8x128xf32>, vector<128x128xf32>, vector<8x128xf32> -> vector<8x128xf32>
    %11 = vector.broadcast %9 : vector<1x128xf32> to vector<8x128xf32>
    %12 = arith.addf %10, %11 : vector<8x128xf32>
    %cst_11 = arith.constant 0.000000e+00 : f32
    %13 = vector.broadcast %cst_11 : f32 to vector<8x128xf32>
    %14 = arith.maximumf %12, %13 : vector<8x128xf32>
    %c0_12 = arith.constant 0 : index
    %c0_13 = arith.constant 0 : index
    %15 = vector.load %arg6[%c0_12, %c0_13] : memref<128x128xf32, #tpu.memory_space<vmem>>, vector<128x128xf32>
    %c0_14 = arith.constant 0 : index
    %c0_15 = arith.constant 0 : index
    %16 = vector.load %arg7[%c0_14, %c0_15] : memref<1x128xf32, #tpu.memory_space<vmem>>, vector<1x128xf32>
    %cst_16 = arith.constant dense<0.000000e+00> : vector<8x128xf32>
    %17 = tpu.matmul %14, %15, %cst_16 {dimension_numbers = #tpu.dot_dimension_numbers<[1], [0], [0], [1], [0, 0, 1, 1], [], []>, precision = #tpu.contract_precision<fp32>} : vector<8x128xf32>, vector<128x128xf32>, vector<8x128xf32> -> vector<8x128xf32>
    %18 = vector.broadcast %16 : vector<1x128xf32> to vector<8x128xf32>
    %19 = arith.addf %17, %18 : vector<8x128xf32>
    %c0_17 = arith.constant 0 : index
    %c0_18 = arith.constant 0 : index
    %20 = vector.load %arg8[%c0_17, %c0_18] : memref<8x128xf32, #tpu.memory_space<vmem>>, vector<8x128xf32>
    tpu.vector_store %arg8[%c0_17, %c0_18], %19 {strides = array<i32>} : memref<8x128xf32, #tpu.memory_space<vmem>>, vector<8x128xf32>,
    return
  }
  func.func @transform_0(%arg0: i32) -> (i32, i32) {
    %c0_i32 = arith.constant 0 : i32
    %c0_i32_0 = arith.constant 0 : i32
    return %arg0, %c0_i32 : i32, i32
  }
  func.func @transform_1(%arg0: i32) -> (i32, i32) {
    %c0_i32 = arith.constant 0 : i32
    %c0_i32_0 = arith.constant 0 : i32
    %c0_i32_1 = arith.constant 0 : i32
    return %c0_i32, %c0_i32_0 : i32, i32
  }
  func.func @transform_2(%arg0: i32) -> (i32, i32) {
    %c0_i32 = arith.constant 0 : i32
    %c0_i32_0 = arith.constant 0 : i32
    %c0_i32_1 = arith.constant 0 : i32
    return %c0_i32, %c0_i32_0 : i32, i32
  }
  func.func @transform_3(%arg0: i32) -> (i32, i32) {
    %c0_i32 = arith.constant 0 : i32
    %c0_i32_0 = arith.constant 0 : i32
    %c0_i32_1 = arith.constant 0 : i32
    return %c0_i32, %c0_i32_0 : i32, i32
  }
  func.func @transform_4(%arg0: i32) -> (i32, i32) {
    %c0_i32 = arith.constant 0 : i32
    %c0_i32_0 = arith.constant 0 : i32
    %c0_i32_1 = arith.constant 0 : i32
    return %c0_i32, %c0_i32_0 : i32, i32
  }
  func.func @transform_5(%arg0: i32) -> (i32, i32) {
    %c0_i32 = arith.constant 0 : i32
    %c0_i32_0 = arith.constant 0 : i32
    %c0_i32_1 = arith.constant 0 : i32
    return %c0_i32, %c0_i32_0 : i32, i32
  }
  func.func @transform_6(%arg0: i32) -> (i32, i32) {
    %c0_i32 = arith.constant 0 : i32
    %c0_i32_0 = arith.constant 0 : i32
    %c0_i32_1 = arith.constant 0 : i32
    return %c0_i32, %c0_i32_0 : i32, i32
  }
  func.func @transform_7(%arg0: i32) -> (i32, i32) {
    %c0_i32 = arith.constant 0 : i32
    %c0_i32_0 = arith.constant 0 : i32
    return %arg0, %c0_i32 : i32, i32
  }
}

</mosaic_0001>

<bundles_post_ra>
// kernel: encoder_forward.1
= control target key start
LH: loop header
LB: loop body
LE: loop exit
PB: predicated region body
PF: predicated region fallthrough
CT: control target
= control target key end

     0   :  { %12 = vsyncpa [#allocation3], 0  ;;  %s3512_s0 = inlined_call_operand.hbm [shape: f32[8,16], index: 0, kind: input, shape index: {}]   ;;  %s3513_s1 = inlined_call_operand.hbm [shape: f32[16,128], index: 1, kind: input, shape index: {}]   ;;  %s3514_s2 = inlined_call_operand.vmem [shape: f32[1,128], index: 2, kind: input, shape index: {}]   ;;  %s3515_s3 = inlined_call_operand.hbm [shape: f32[128,128], index: 3, kind: input, shape index: {}]   ;;  %s3516_s4 = inlined_call_operand.vmem [shape: f32[1,128], index: 4, kind: input, shape index: {}]   ;;  %s3517_s5 = inlined_call_operand.hbm [shape: f32[128,128], index: 5, kind: input, shape index: {}]   ;;  %s3518_s6 = inlined_call_operand.vmem [shape: f32[1,128], index: 6, kind: input, shape index: {}]   ;;  %s3519_s7 = inlined_call_operand.vmem [shape: f32[8,128], index: 7, kind: output, shape index: {}]  }
   0x1   :  { %13 = vsyncpa [#allocation5], 0 }
   0x2   :  { %14 = vsyncpa [#allocation8], 0  ;;  %s2671_s24 = smov [#allocation4]  }
   0x3   :  { %s30_s25 = sshll.u32 %s2671_s24, 4  ;;  %s31_s25 = int_to_ptr.vmem [resolvable:$true] %s30_s25 }
   0x4   :  { %s2593_s26 = scalar_lea.vmem %s31_s25, 256  ;;  %p2598_p1 = scmp.lt.s32.totalorder %s31_s25, %s31_s25 }
   0x5   :  { %p2594_p0 = scmp.ne.s32.totalorder %s31_s25, %s2593_s26  ;;  %p2599_p2 = scmp.lt.s32.totalorder %s2593_s26, %s2593_s26 }
   0x7   :  { %p2600_p3 = por %p2599_p2, %p2598_p1 }
   0x9   :  { %p2601_p4 = pnand %p2600_p3, %p2594_p0 }
   0xb   :  { %2604 = shalt.err (!%p2601_p4)
}
   0xc   :  { %s2672_s27 = smov 128   ;;  %s2673_s28 = smov 8  }
   0xd   :  { %36 = dma.hbm_to_vmem [thread:$0]  %s3513_s1, 256, %s31_s25, [#allocation5], %s2672_s27, %s2672_s27, %s2673_s28  }
   0xe   :  { %s2674_s8 = smov [#allocation2]   ;;  %s2675_s10 = smov [#allocation6]  }
   0xf   :  { %s21_s9 = sshll.u32 %s2674_s8, 4  ;;  %s44_s11 = sshll.u32 %s2675_s10, 4  ;;  %s22_s9 = int_to_ptr.vmem [resolvable:$true] %s21_s9  ;;  %s45_s11 = int_to_ptr.vmem [resolvable:$true] %s44_s11 }
  0x10   :  { %s2613_s12 = scalar_lea.vmem %s22_s9, 128  ;;  %p2618_p6 = scmp.lt.s32.totalorder %s22_s9, %s22_s9 }
  0x11   :  { %p2614_p5 = scmp.ne.s32.totalorder %s22_s9, %s2613_s12  ;;  %p2619_p7 = scmp.lt.s32.totalorder %s2613_s12, %s2613_s12 }
  0x13   :  { %p2620_p8 = por %p2619_p7, %p2618_p6 }
  0x15   :  { %p2621_p9 = pnand %p2620_p8, %p2614_p5 }
  0x17   :  { %2624 = shalt.err (!%p2621_p9)
}
  0x18   :  { %24 = dma.hbm_to_vmem [thread:$0]  %s3512_s0, 128, %s22_s9, [#allocation3]  }
  0x19   :  { %s2633_s15 = scalar_lea.vmem %s45_s11, 2048  ;;  %p2638_p11 = scmp.lt.s32.totalorder %s45_s11, %s45_s11 }
  0x1a   :  { %p2634_p10 = scmp.ne.s32.totalorder %s45_s11, %s2633_s15  ;;  %p2639_p12 = scmp.lt.s32.totalorder %s2633_s15, %s2633_s15 }
  0x1c   :  { %p2640_p13 = por %p2639_p12, %p2638_p11 }
  0x1e   :  { %p2641_p0 = pnand %p2640_p13, %p2634_p10 }
  0x20   :  { %2644 = shalt.err (!%p2641_p0)
}
  0x21   :  { %50 = dma.hbm_to_vmem [thread:$0]  %s3515_s3, 2048, %s45_s11, [#allocation5], %s2672_s27, %s2672_s27, %s2673_s28  }
  0x22   :  { %s2676_s17 = smov [#allocation7]  }
  0x23   :  { %s58_s18 = sshll.u32 %s2676_s17, 4  ;;  %s59_s18 = int_to_ptr.vmem [resolvable:$true] %s58_s18 }
  0x24   :  { %s2653_s19 = scalar_lea.vmem %s59_s18, 2048  ;;  %p2658_p2 = scmp.lt.s32.totalorder %s59_s18, %s59_s18 }
  0x25   :  { %p2654_p1 = scmp.ne.s32.totalorder %s59_s18, %s2653_s19  ;;  %p2659_p3 = scmp.lt.s32.totalorder %s2653_s19, %s2653_s19 }
  0x27   :  { %p2660_p4 = por %p2659_p3, %p2658_p2 }
  0x29   :  { %p2661_p5 = pnand %p2660_p4, %p2654_p1 }
  0x2b   :  { %2664 = shalt.err (!%p2661_p5)
}
  0x2c   :  { %64 = dma.hbm_to_vmem [thread:$0]  %s3517_s5, 2048, %s59_s18, [#allocation8], %s2672_s27, %s2672_s27, %s2673_s28  }
  0x2d   :  { %2665 = dma.done.wait [#allocation3], 128  }
  0x2e   :  { %2666 = vsyncadd [#allocation3], 4294967168 }
  0x2f   :  { %2667 = dma.done.wait [#allocation5], 2304  }
  0x30   :  { %2668 = vsyncadd [#allocation5], 4294964992 }
  0x31   :  { %2669 = dma.done.wait [#allocation8], 2048  }
  0x32   :  { %2670 = vsyncadd [#allocation8], 4294965248  ;;  %v2677_v0 = vmov 0.0   ;;  %vm2678_vm0 = vmmov 0   ;;  %vm89_vm1 = vcmask 130048   ;;  %v81_v1 = vld [vmem:[#allocation4 + $0x8] sm:$0xff] }
  0x33   :  { %2115 = vmatprep.subr.mxu0 %v2677_v0  ;;  %2122 = vmatprep.subr.mxu1 %v2677_v0  ;;  %v80_v2 = vld [vmem:[#allocation4] sm:$0xff]  ;;  %v79_v3 = vld [vmem:[#allocation2] sm:$0xff]  ;;  %v2746_v4 = vand.u32 4294901760, %v81_v1  ;;  %v568_v10 = vld [vmem:[#allocation6 + $0x78] sm:$0xff] }
  0x34   :  { %2119 = vmatprep.mubr.msk.f32.mxu0 %vm2678_vm0, %v2677_v0  ;;  %2126 = vmatprep.mubr.msk.f32.mxu1 %vm2678_vm0, %v2677_v0  ;;  %v2748_v5 = vand.u32 4294901760, %v80_v2  ;;  %v91_v6 = vsel %vm89_vm1, %v79_v3, 0  ;;  %v567_v14 = vld [vmem:[#allocation6 + $0x70] sm:$0xff]  ;;  %v2759_v16 = vand.u32 4294901760, %v568_v10  ;;  %v566_v19 = vld [vmem:[#allocation6 + $0x68] sm:$0xff]  ;;  %v565_v24 = vld [vmem:[#allocation6 + $0x60] sm:$0xff] }
  0x35   :  { %v2750_v7 = vand.u32 4294901760, %v91_v6  ;;  %2116 = vmatpush3.msra.mxu0 %v2746_v4  ;;  %v200_v8 = vsub.f32 %v81_v1, %v2746_v4  ;;  %v2761_v21 = vand.u32 4294901760, %v567_v14  ;;  %v2766_v27 = vand.u32 4294901760, %v566_v19  ;;  %v564_v28 = vld [vmem:[#allocation6 + $0x58] sm:$0xff]  ;;  %v563_v31 = vld [vmem:[#allocation6 + $0x50] sm:$0xff]  ;;  %v562_v35 = vld [vmem:[#allocation6 + $0x48] sm:$0xff] }
  0x36   :  { %v207_v9 = vsub.f32 %v80_v2, %v2748_v5  ;;  %2117 = vmatprep.subr.mxu0 %v2677_v0  ;;  %v2764_v26 = vsub.f32 %v568_v10, %v2759_v16  ;;  %v2772_v30 = vand.u32 4294901760, %v565_v24  ;;  %v2780_v34 = vand.u32 4294901760, %v564_v28  ;;  %v561_v39 = vld [vmem:[#allocation6 + $0x40] sm:$0xff]  ;;  %v558_v10 = vld [vmem:[#allocation6 + $0x28] sm:$0xff] }
  0x37   :  { %v161_v11 = vsub.f32 %v91_v6, %v2750_v7  ;;  %2118 = vmatpush3.msra.mxu0 %v2748_v5  ;;  %v201_v12 = vand.u32 4294901760, %v200_v8  ;;  %v2770_v29 = vsub.f32 %v567_v14, %v2761_v21  ;;  %v2778_v33 = vsub.f32 %v566_v19, %v2766_v27  ;;  %v557_v14 = vld [vmem:[#allocation6 + $0x20] sm:$0xff] }
  0x38   :  { %v208_v13 = vand.u32 4294901760, %v207_v9  ;;  %2129 = vmatprep.subr.mxu0 %v2677_v0  ;;  %v670_v32 = vand.u32 4294901760, %v2764_v26  ;;  %v2788_v37 = vsub.f32 %v565_v24, %v2772_v30  ;;  %v2790_v38 = vand.u32 4294901760, %v563_v31 }
  0x39   :  { %v162_v15 = vand.u32 4294901760, %v161_v11  ;;  %v202_v17 = vsub.f32 %v200_v8, %v201_v12  ;;  %v677_v36 = vand.u32 4294901760, %v2770_v29  ;;  %v684_v41 = vand.u32 4294901760, %v2778_v33 }
  0x3a   :  { %v209_v18 = vsub.f32 %v207_v9, %v208_v13  ;;  %v671_v40 = vsub.f32 %v2764_v26, %v670_v32  ;;  %v2800_v42 = vsub.f32 %v564_v28, %v2780_v34  ;;  %v2802_v43 = vand.u32 4294901760, %v562_v35 }
  0x3b   :  { %v163_v20 = vsub.f32 %v161_v11, %v162_v15  ;;  %v203_v22 = vand.u32 4294901760, %v202_v17  ;;  %v678_v44 = vsub.f32 %v2770_v29, %v677_v36  ;;  %v691_v45 = vand.u32 4294901760, %v2788_v37 }
  0x3c   :  { %v210_v23 = vand.u32 4294901760, %v209_v18  ;;  %v2812_v46 = vsub.f32 %v563_v31, %v2790_v38  ;;  %v2814_v47 = vand.u32 4294901760, %v561_v39  ;;  %v672_v48 = vand.u32 4294901760, %v671_v40  ;;  %v555_v31 = vld [vmem:[#allocation6 + $0x10] sm:$0xff] }
  0x3d   :  { %v164_v25 = vand.u32 4294901760, %v163_v20  ;;  %2123 = vmatpush3.msra.mxu1 %v203_v22  ;;  %v685_v49 = vsub.f32 %v2778_v33, %v684_v41  ;;  %v698_v50 = vand.u32 4294901760, %v2800_v42  ;;  %v2825_v51 = vsub.f32 %v562_v35, %v2802_v43  ;;  %v556_v20 = vld [vmem:[#allocation6 + $0x18] sm:$0xff] }
  0x3e   :  { %2124 = vmatprep.subr.mxu1 %v2677_v0  ;;  %v679_v52 = vand.u32 4294901760, %v678_v44  ;;  %v692_v53 = vsub.f32 %v2788_v37, %v691_v45  ;;  %v705_v54 = vand.u32 4294901760, %v2812_v46  ;;  %v2837_v55 = vsub.f32 %v561_v39, %v2814_v47 }
  0x3f   :  { %2120 = vmatmul.mubr.f32.vlgmr.msra.gmra.mxu0 %v164_v25  ;;  %2125 = vmatpush3.msra.mxu1 %v210_v23  ;;  %v686_v56 = vand.u32 4294901760, %v685_v49  ;;  %v699_v57 = vsub.f32 %v2800_v42, %v698_v50  ;;  %v712_v58 = vand.u32 4294901760, %v2825_v51  ;;  %v2908_v19 = vand.u32 4294901760, %v557_v14  ;;  %v554_v49 = vld [vmem:[#allocation6 + $0x8] sm:$0xff] }
  0x40   :  { %2130 = vmatpush3.msra.mxu0 %v200_v8  ;;  %2127 = vmatmul.mubr.f32.vlgmr.msra.gmra.mxu1 %v2750_v7  ;;  %v693_v59 = vand.u32 4294901760, %v692_v53  ;;  %v706_v60 = vsub.f32 %v2812_v46, %v705_v54  ;;  %v719_v61 = vand.u32 4294901760, %v2837_v55  ;;  %v2920_v28 = vand.u32 4294901760, %v556_v20 }
  0x41   :  { %2131 = vmatprep.subr.mxu0 %v2677_v0  ;;  %2136 = vmatprep.subr.mxu1 %v2677_v0  ;;  %v700_v62 = vand.u32 4294901760, %v699_v57  ;;  %v713_v63 = vsub.f32 %v2825_v51, %v712_v58  ;;  %v2917_v25 = vsub.f32 %v557_v14, %v2908_v19  ;;  %v2927_v44 = vand.u32 4294901760, %v555_v31 }
  0x42   :  { %2132 = vmatpush3.msra.mxu0 %v207_v9  ;;  %2133 = vmatprep.mubr.msk.f32.mxu0 %vm2678_vm0, %v2677_v0  ;;  %v707_v1 = vand.u32 4294901760, %v706_v60  ;;  %v720_v2 = vsub.f32 %v2837_v55, %v719_v61  ;;  %v2940_v57 = vand.u32 4294901760, %v554_v49  ;;  %v553_v60 = vld [vmem:[#allocation6] sm:$0xff] }
  0x43   :  { %2137 = vmatpush3.msra.mxu1 %v2746_v4  ;;  %2134 = vmatmul.mubr.f32.vlgmr.msra.gmra.mxu0 %v161_v11  ;;  %v714_v3 = vand.u32 4294901760, %v713_v63  ;;  %v3524_v40 = vand.u32 4294901760, %v2917_v25 }
  0x44   :  { %2138 = vmatprep.subr.mxu1 %v2677_v0  ;;  %2143 = vmatprep.subr.mxu0 %v2677_v0 }
  0x45   :  { %2139 = vmatpush3.msra.mxu1 %v2748_v5  ;;  %2140 = vmatprep.mubr.msk.f32.mxu1 %vm2678_vm0, %v2677_v0  ;;  %v748_v53 = vsub.f32 %v2917_v25, %v3524_v40 }
  0x46   :  { %2144 = vmatpush3.msra.mxu0 %v201_v12  ;;  %2141 = vmatmul.mubr.f32.vlgmr.msra.gmra.mxu1 %v162_v15 }
  0x47   :  { %2145 = vmatprep.subr.mxu0 %v2677_v0  ;;  %2150 = vmatprep.subr.mxu1 %v2677_v0 }
  0x48   :  { %2146 = vmatpush3.msra.mxu0 %v208_v13  ;;  %2147 = vmatprep.mubr.msk.f32.mxu0 %vm2678_vm0, %v2677_v0  ;;  %v2897_v13 = vand.u32 4294901760, %v558_v10 }
  0x49   :  { %2151 = vmatpush3.msra.mxu1 %v2746_v4  ;;  %2148 = vmatmul.mubr.f32.vlgmr.msra.gmra.mxu0 %v2750_v7  ;;  %v721_v4 = vand.u32 4294901760, %v720_v2  ;;  %v2950_v2 = vand.u32 4294901760, %v553_v60 }
  0x4a   :  { %2152 = vmatprep.subr.mxu1 %v2677_v0  ;;  %2154 = vmatprep.mubr.msk.f32.mxu1 %vm2678_vm0, %v2677_v0  ;;  %v2906_v18 = vsub.f32 %v558_v10, %v2897_v13 }
  0x4b   :  { %2153 = vmatpush3.msra.mxu1 %v2748_v5  ;;  %2157 = vmatprep.subr.mxu0 %v2677_v0  ;;  %v560_v5 = vld [vmem:[#allocation6 + $0x38] sm:$0xff] }
  0x4c   :  { %2155 = vmatmul.mubr.f32.vlgmr.msra.gmra.mxu1 %v2750_v7  ;;  %2192 = vmatprep.subr.mxu1 %v2677_v0  ;;  %v2884_v6 = vand.u32 4294901760, %v560_v5  ;;  %v559_v7 = vld [vmem:[#allocation6 + $0x30] sm:$0xff]  ;;  %v3525_v24 = vand.u32 4294901760, %v2906_v18 }
  0x4d   :  { %2193 = vmatpush3.msra.mxu1 %v672_v48  ;;  %2158 = vmatpush3.msra.mxu0 %v2759_v16  ;;  %v2889_v9 = vand.u32 4294901760, %v559_v7  ;;  %v2931_v48 = vsub.f32 %v556_v20, %v2920_v28 }
  0x4e   :  { %2194 = vmatprep.subr.mxu1 %v2677_v0  ;;  %2159 = vmatprep.subr.mxu0 %v2677_v0  ;;  %v2887_v8 = vsub.f32 %v560_v5, %v2884_v6  ;;  %v741_v39 = vsub.f32 %v2906_v18, %v3525_v24 }
  0x4f   :  { %2195 = vmatpush3.msra.mxu1 %v679_v52  ;;  %2160 = vmatpush3.msra.mxu0 %v2761_v21  ;;  %v2895_v12 = vsub.f32 %v559_v7, %v2889_v9  ;;  %v2963_v7 = vsub.f32 %v553_v60, %v2950_v2 }
  0x50   :  { %2196 = vmatprep.subr.mxu1 %v2677_v0  ;;  %2161 = vmatprep.subr.mxu0 %v2677_v0  ;;  %v726_v11 = vand.u32 4294901760, %v2887_v8  ;;  %v742_v52 = vand.u32 4294901760, %v741_v39 }
  0x51   :  { %2197 = vmatpush3.msra.mxu1 %v686_v56  ;;  %2162 = vmatpush3.msra.mxu0 %v2766_v27  ;;  %v733_v17 = vand.u32 4294901760, %v2895_v12  ;;  %v2938_v56 = vsub.f32 %v555_v31, %v2927_v44  ;;  %v3520_v20 = vand.u32 4294901760, %v2963_v7 }
  0x52   :  { %2198 = vmatprep.subr.mxu1 %v2677_v0  ;;  %2163 = vmatprep.subr.mxu0 %v2677_v0  ;;  %v727_v15 = vsub.f32 %v2887_v8, %v726_v11 }
  0x53   :  { %2199 = vmatpush3.msra.mxu1 %v693_v59  ;;  %2164 = vmatpush3.msra.mxu0 %v2772_v30  ;;  %v734_v23 = vsub.f32 %v2895_v12, %v733_v17  ;;  %v3523_v59 = vand.u32 4294901760, %v2931_v48  ;;  %v3522_v63 = vand.u32 4294901760, %v2938_v56 }
  0x54   :  { %2200 = vmatprep.subr.mxu1 %v2677_v0  ;;  %2165 = vmatprep.subr.mxu0 %v2677_v0  ;;  %v728_v22 = vand.u32 4294901760, %v727_v15 }
  0x55   :  { %2201 = vmatpush3.msra.mxu1 %v700_v62  ;;  %2166 = vmatpush3.msra.mxu0 %v2780_v34  ;;  %v735_v35 = vand.u32 4294901760, %v734_v23  ;;  %v749_v62 = vand.u32 4294901760, %v748_v53  ;;  %v776_v23 = vsub.f32 %v2963_v7, %v3520_v20 }
  0x56   :  { %2202 = vmatprep.subr.mxu1 %v2677_v0  ;;  %2167 = vmatprep.subr.mxu0 %v2677_v0 }
  0x57   :  { %2203 = vmatpush3.msra.mxu1 %v707_v1  ;;  %2168 = vmatpush3.msra.mxu0 %v2790_v38  ;;  %v2948_v1 = vsub.f32 %v554_v49, %v2940_v57  ;;  %v777_v31 = vand.u32 4294901760, %v776_v23 }
  0x58   :  { %2204 = vmatprep.subr.mxu1 %v2677_v0  ;;  %2169 = vmatprep.subr.mxu0 %v2677_v0 }
  0x59   :  { %2205 = vmatpush3.msra.mxu1 %v714_v3  ;;  %2170 = vmatpush3.msra.mxu0 %v2802_v43  ;;  %v755_v3 = vsub.f32 %v2931_v48, %v3523_v59  ;;  %v3521_v5 = vand.u32 4294901760, %v2948_v1 }
  0x5a   :  { %2206 = vmatprep.subr.mxu1 %v2677_v0  ;;  %2171 = vmatprep.subr.mxu0 %v2677_v0 }
  0x5b   :  { %2207 = vmatpush3.msra.mxu1 %v721_v4  ;;  %2172 = vmatpush3.msra.mxu0 %v2814_v47  ;;  %v762_v4 = vsub.f32 %v2938_v56, %v3522_v63  ;;  %v756_v10 = vand.u32 4294901760, %v755_v3  ;;  %v769_v15 = vsub.f32 %v2948_v1, %v3521_v5 }
  0x5c   :  { %2208 = vmatprep.subr.mxu1 %v2677_v0  ;;  %2173 = vmatprep.subr.mxu0 %v2677_v0 }
  0x5d   :  { %2224 = vmatprep.mubr.msk.f32.mxu1 %vm2678_vm0, %v2677_v0  ;;  %2189 = vmatprep.mubr.msk.f32.mxu0 %vm2678_vm0, %v2677_v0  ;;  %v763_v14 = vand.u32 4294901760, %v762_v4 }
  0x5e   :  { %2174 = vmatpush3.msra.mxu0 %v2884_v6  ;;  %2209 = vmatpush3.msra.mxu1 %v728_v22  ;;  %v770_v22 = vand.u32 4294901760, %v769_v15 }
  0x5f   :  { %2175 = vmatprep.subr.mxu0 %v2677_v0  ;;  %2210 = vmatprep.subr.mxu1 %v2677_v0 }
  0x60   :  { %2176 = vmatpush3.msra.mxu0 %v2889_v9  ;;  %2211 = vmatpush3.msra.mxu1 %v735_v35  ;;  %v1890_v35 = vld [vmem:[%s3514_s2] ss:$0 sm:$0xff] }
  0x61   :  { %2177 = vmatprep.subr.mxu0 %v2677_v0  ;;  %2212 = vmatprep.subr.mxu1 %v2677_v0 }
  0x62   :  { %2178 = vmatpush3.msra.mxu0 %v2897_v13  ;;  %2213 = vmatpush3.msra.mxu1 %v742_v52 }
  0x63   :  { %2179 = vmatprep.subr.mxu0 %v2677_v0  ;;  %2214 = vmatprep.subr.mxu1 %v2677_v0 }
  0x64   :  { %2180 = vmatpush3.msra.mxu0 %v2908_v19  ;;  %2215 = vmatpush3.msra.mxu1 %v749_v62 }
  0x65   :  { %2181 = vmatprep.subr.mxu0 %v2677_v0  ;;  %2216 = vmatprep.subr.mxu1 %v2677_v0 }
  0x66   :  { %2182 = vmatpush3.msra.mxu0 %v2920_v28  ;;  %2217 = vmatpush3.msra.mxu1 %v756_v10 }
  0x67   :  { %2183 = vmatprep.subr.mxu0 %v2677_v0  ;;  %2218 = vmatprep.subr.mxu1 %v2677_v0 }
  0x68   :  { %2184 = vmatpush3.msra.mxu0 %v2927_v44  ;;  %2219 = vmatpush3.msra.mxu1 %v763_v14 }
  0x69   :  { %2185 = vmatprep.subr.mxu0 %v2677_v0  ;;  %2220 = vmatprep.subr.mxu1 %v2677_v0 }
  0x6a   :  { %2186 = vmatpush3.msra.mxu0 %v2940_v57  ;;  %2221 = vmatpush3.msra.mxu1 %v770_v22 }
  0x6b   :  { %2187 = vmatprep.subr.mxu0 %v2677_v0  ;;  %2222 = vmatprep.subr.mxu1 %v2677_v0 }
  0x6c   :  { %2188 = vmatpush3.msra.mxu0 %v2950_v2  ;;  %2223 = vmatpush3.msra.mxu1 %v777_v31 }
  0x6d   :  { %2227 = vmatprep.subr.mxu0 %v2677_v0  ;;  %2262 = vmatprep.subr.mxu1 %v2677_v0 }
  0xff   :  { %v166_v39 = vpop.f32.mrf.mxu0 }
 0x100   :  { %v167_v49 = vadd.f32 %v1890_v35, %v166_v39  ;;  %v247_v53 = vpop.f32.mrf.mxu1 }
 0x101   :  { %v2121_v52 = vpop.f32.mrf.mxu0 }
 0x102   :  { %v248_v60 = vadd.f32 %v247_v53, %v167_v49  ;;  %v2128_v62 = vpop.f32.mrf.mxu1 }
 0x103   :  { %v323_v3 = vpop.f32.mrf.mxu0  ;;  %v1225_v62 = vld [vmem:[#allocation7 + $0x38] sm:$0xff] }
 0x104   :  { %v324_v4 = vadd.f32 %v323_v3, %v248_v60 }
 0x105   :  { %v2135_v10 = vpop.f32.mrf.mxu0 }
 0x106   :  { %v398_v14 = vpop.f32.mrf.mxu1  ;;  %v3239_v10 = vand.u32 4294901760, %v1225_v62 }
 0x107   :  { %v399_v15 = vadd.f32 %v398_v14, %v324_v4  ;;  %v1224_v14 = vld [vmem:[#allocation7 + $0x30] sm:$0xff] }
 0x108   :  { %v2142_v22 = vpop.f32.mrf.mxu1 }
 0x109   :  { %v475_v23 = vpop.f32.mrf.mxu0  ;;  %v3245_v22 = vsub.f32 %v1225_v62, %v3239_v10 }
 0x10a   :  { %v476_v31 = vadd.f32 %v475_v23, %v399_v15  ;;  %v3247_v23 = vand.u32 4294901760, %v1224_v14 }
 0x10b   :  { %v2149_v20 = vpop.f32.mrf.mxu0 }
 0x10c   :  { %v548_v5 = vpop.f32.mrf.mxu1 }
 0x10d   :  { %v549_v63 = vadd.f32 %v548_v5, %v476_v31  ;;  %v1223_v31 = vld [vmem:[#allocation7 + $0x28] sm:$0xff] }
 0x10e   :  { %v2156_v59 = vpop.f32.mrf.mxu1 }
 0x10f   :  { %v552_v40 = vmax.f32 %v549_v63, 0.0 }
 0x111   :  { %v2983_v24 = vand.u32 4294901760, %v552_v40 }
 0x113   :  { %v2986_v35 = vsub.f32 %v552_v40, %v2983_v24  ;;  %2225 = vmatmul.mubr.f32.vlgmr.msra.gmra.mxu1 %v2983_v24 }
 0x114   :  { %2263 = vmatpush3.msra.mxu1 %v2759_v16  ;;  %2294 = vmatprep.mubr.msk.f32.mxu1 %vm2678_vm0, %v2677_v0 }
 0x115   :  { %v659_v39 = vand.u32 4294901760, %v2986_v35  ;;  %2264 = vmatprep.subr.mxu1 %v2677_v0 }
 0x116   :  { %2265 = vmatpush3.msra.mxu1 %v2761_v21 }
 0x117   :  { %v660_v59 = vsub.f32 %v2986_v35, %v659_v39  ;;  %2266 = vmatprep.subr.mxu1 %v2677_v0 }
 0x118   :  { %2267 = vmatpush3.msra.mxu1 %v2766_v27 }
 0x119   :  { %2268 = vmatprep.subr.mxu1 %v2677_v0  ;;  %v661_v40 = vand.u32 4294901760, %v660_v59  ;;  %v3254_v59 = vsub.f32 %v1224_v14, %v3247_v23 }
 0x11a   :  { %2269 = vmatpush3.msra.mxu1 %v2772_v30 }
 0x11b   :  { %2270 = vmatprep.subr.mxu1 %v2677_v0  ;;  %2190 = vmatmul.mubr.f32.vlgmr.msra.gmra.mxu0 %v661_v40  ;;  %v3256_v40 = vand.u32 4294901760, %v1223_v31 }
 0x11c   :  { %2228 = vmatpush3.msra.mxu0 %v2764_v26  ;;  %2271 = vmatpush3.msra.mxu1 %v2780_v34  ;;  %v3532_v26 = vand.u32 4294901760, %v2931_v48 }
 0x11d   :  { %2229 = vmatprep.subr.mxu0 %v2677_v0  ;;  %2272 = vmatprep.subr.mxu1 %v2677_v0 }
 0x11e   :  { %2230 = vmatpush3.msra.mxu0 %v2770_v29  ;;  %2273 = vmatpush3.msra.mxu1 %v2790_v38  ;;  %v3534_v29 = vand.u32 4294901760, %v2948_v1 }
 0x11f   :  { %2231 = vmatprep.subr.mxu0 %v2677_v0  ;;  %2274 = vmatprep.subr.mxu1 %v2677_v0 }
 0x120   :  { %2232 = vmatpush3.msra.mxu0 %v2778_v33  ;;  %2275 = vmatpush3.msra.mxu1 %v2802_v43 }
 0x121   :  { %2233 = vmatprep.subr.mxu0 %v2677_v0  ;;  %2276 = vmatprep.subr.mxu1 %v2677_v0 }
 0x122   :  { %2234 = vmatpush3.msra.mxu0 %v2788_v37  ;;  %2277 = vmatpush3.msra.mxu1 %v2814_v47 }
 0x123   :  { %2235 = vmatprep.subr.mxu0 %v2677_v0  ;;  %2278 = vmatprep.subr.mxu1 %v2677_v0 }
 0x124   :  { %2236 = vmatpush3.msra.mxu0 %v2800_v42  ;;  %2279 = vmatpush3.msra.mxu1 %v2884_v6  ;;  %v1229_v42 = vld [vmem:[#allocation7 + $0x58] sm:$0xff] }
 0x125   :  { %2237 = vmatprep.subr.mxu0 %v2677_v0  ;;  %2280 = vmatprep.subr.mxu1 %v2677_v0 }
 0x126   :  { %2238 = vmatpush3.msra.mxu0 %v2812_v46  ;;  %2281 = vmatpush3.msra.mxu1 %v2889_v9  ;;  %v3162_v46 = vand.u32 4294901760, %v1229_v42 }
 0x127   :  { %2239 = vmatprep.subr.mxu0 %v2677_v0  ;;  %2282 = vmatprep.subr.mxu1 %v2677_v0 }
 0x128   :  { %2240 = vmatpush3.msra.mxu0 %v2825_v51  ;;  %2283 = vmatpush3.msra.mxu1 %v2897_v13  ;;  %v1226_v51 = vld [vmem:[#allocation7 + $0x40] sm:$0xff] }
 0x129   :  { %2241 = vmatprep.subr.mxu0 %v2677_v0  ;;  %2284 = vmatprep.subr.mxu1 %v2677_v0 }
 0x12a   :  { %2242 = vmatpush3.msra.mxu0 %v2837_v55  ;;  %2285 = vmatpush3.msra.mxu1 %v2908_v19 }
 0x12b   :  { %2243 = vmatprep.subr.mxu0 %v2677_v0  ;;  %2286 = vmatprep.subr.mxu1 %v2677_v0 }
 0x12c   :  { %2244 = vmatpush3.msra.mxu0 %v2887_v8  ;;  %2287 = vmatpush3.msra.mxu1 %v2920_v28 }
 0x12d   :  { %2245 = vmatprep.subr.mxu0 %v2677_v0  ;;  %2288 = vmatprep.subr.mxu1 %v2677_v0 }
 0x12e   :  { %2246 = vmatpush3.msra.mxu0 %v2895_v12  ;;  %2289 = vmatpush3.msra.mxu1 %v2927_v44 }
 0x12f   :  { %2247 = vmatprep.subr.mxu0 %v2677_v0  ;;  %2290 = vmatprep.subr.mxu1 %v2677_v0 }
 0x130   :  { %2248 = vmatpush3.msra.mxu0 %v2906_v18  ;;  %2291 = vmatpush3.msra.mxu1 %v2940_v57 }
 0x131   :  { %2249 = vmatprep.subr.mxu0 %v2677_v0  ;;  %2292 = vmatprep.subr.mxu1 %v2677_v0 }
 0x132   :  { %2250 = vmatpush3.msra.mxu0 %v2917_v25  ;;  %2293 = vmatpush3.msra.mxu1 %v2950_v2 }
 0x133   :  { %2251 = vmatprep.subr.mxu0 %v2677_v0  ;;  %2295 = vmatmul.mubr.f32.vlgmr.msra.gmra.mxu1 %v659_v39  ;;  %v1391_v39 = vand.u32 4294901760, %v3245_v22 }
 0x134   :  { %2332 = vmatprep.subr.mxu1 %v2677_v0  ;;  %2252 = vmatpush3.msra.mxu0 %v2931_v48 }
 0x135   :  { %2333 = vmatpush3.msra.mxu1 %v2759_v16  ;;  %2253 = vmatprep.subr.mxu0 %v2677_v0  ;;  %v3530_v16 = vand.u32 4294901760, %v2906_v18 }
 0x136   :  { %2334 = vmatprep.subr.mxu1 %v2677_v0  ;;  %2254 = vmatpush3.msra.mxu0 %v2938_v56 }
 0x137   :  { %2335 = vmatpush3.msra.mxu1 %v2761_v21  ;;  %2255 = vmatprep.subr.mxu0 %v2677_v0  ;;  %v3531_v21 = vand.u32 4294901760, %v2917_v25 }
 0x138   :  { %2336 = vmatprep.subr.mxu1 %v2677_v0  ;;  %2256 = vmatpush3.msra.mxu0 %v2948_v1 }
 0x139   :  { %2337 = vmatpush3.msra.mxu1 %v2766_v27  ;;  %2257 = vmatprep.subr.mxu0 %v2677_v0  ;;  %v3533_v27 = vand.u32 4294901760, %v2938_v56 }
 0x13a   :  { %2338 = vmatprep.subr.mxu1 %v2677_v0  ;;  %2258 = vmatpush3.msra.mxu0 %v2963_v7 }
 0x13b   :  { %2259 = vmatprep.mubr.msk.f32.mxu0 %vm2678_vm0, %v2677_v0  ;;  %2339 = vmatpush3.msra.mxu1 %v2772_v30  ;;  %v3535_v30 = vand.u32 4294901760, %v2963_v7 }
 0x13c   :  { %2260 = vmatmul.mubr.f32.vlgmr.msra.gmra.mxu0 %v2986_v35  ;;  %2297 = vmatprep.subr.mxu0 %v2677_v0 }
 0x13d   :  { %2340 = vmatprep.subr.mxu1 %v2677_v0  ;;  %2298 = vmatpush3.msra.mxu0 %v670_v32  ;;  %v1233_v32 = vld [vmem:[#allocation7 + $0x78] sm:$0xff] }
 0x13e   :  { %2341 = vmatpush3.msra.mxu1 %v2780_v34  ;;  %2299 = vmatprep.subr.mxu0 %v2677_v0  ;;  %v3150_v33 = vand.u32 4294901760, %v1233_v32  ;;  %v1232_v34 = vld [vmem:[#allocation7 + $0x70] sm:$0xff] }
 0x13f   :  { %2342 = vmatprep.subr.mxu1 %v2677_v0  ;;  %2300 = vmatpush3.msra.mxu0 %v677_v36  ;;  %v3155_v37 = vand.u32 4294901760, %v1232_v34 }
 0x140   :  { %2343 = vmatpush3.msra.mxu1 %v2790_v38  ;;  %2301 = vmatprep.subr.mxu0 %v2677_v0  ;;  %v3153_v36 = vsub.f32 %v1233_v32, %v3150_v33  ;;  %v1231_v38 = vld [vmem:[#allocation7 + $0x68] sm:$0xff] }
 0x141   :  { %2344 = vmatprep.subr.mxu1 %v2677_v0  ;;  %2302 = vmatpush3.msra.mxu0 %v684_v41  ;;  %v1230_v41 = vld [vmem:[#allocation7 + $0x60] sm:$0xff]  ;;  %v3167_v55 = vsub.f32 %v1232_v34, %v3155_v37 }
 0x142   :  { %2345 = vmatpush3.msra.mxu1 %v2802_v43  ;;  %2303 = vmatprep.subr.mxu0 %v2677_v0  ;;  %v3158_v43 = vand.u32 4294901760, %v1231_v38 }
 0x143   :  { %2346 = vmatprep.subr.mxu1 %v2677_v0  ;;  %2304 = vmatpush3.msra.mxu0 %v691_v45  ;;  %v3160_v45 = vand.u32 4294901760, %v1230_v41 }
 0x144   :  { %2347 = vmatpush3.msra.mxu1 %v2814_v47  ;;  %2305 = vmatprep.subr.mxu0 %v2677_v0  ;;  %v1228_v47 = vld [vmem:[#allocation7 + $0x50] sm:$0xff] }
 0x145   :  { %2348 = vmatprep.subr.mxu1 %v2677_v0  ;;  %2306 = vmatpush3.msra.mxu0 %v698_v50  ;;  %v1227_v50 = vld [vmem:[#allocation7 + $0x48] sm:$0xff]  ;;  %v3178_v8 = vsub.f32 %v1230_v41, %v3160_v45 }
 0x146   :  { %2349 = vmatpush3.msra.mxu1 %v2884_v6  ;;  %2307 = vmatprep.subr.mxu0 %v2677_v0  ;;  %v3175_v6 = vsub.f32 %v1231_v38, %v3158_v43 }
 0x147   :  { %2350 = vmatprep.subr.mxu1 %v2677_v0  ;;  %2308 = vmatpush3.msra.mxu0 %v705_v54  ;;  %v1335_v54 = vand.u32 4294901760, %v3153_v36 }
 0x148   :  { %2351 = vmatpush3.msra.mxu1 %v2889_v9  ;;  %2309 = vmatprep.subr.mxu0 %v2677_v0  ;;  %v3181_v9 = vsub.f32 %v1229_v42, %v3162_v46 }
 0x149   :  { %2352 = vmatprep.subr.mxu1 %v2677_v0  ;;  %2310 = vmatpush3.msra.mxu0 %v712_v58  ;;  %v3170_v58 = vand.u32 4294901760, %v1228_v47  ;;  %v1336_v12 = vsub.f32 %v3153_v36, %v1335_v54 }
 0x14a   :  { %2353 = vmatpush3.msra.mxu1 %v2897_v13  ;;  %2311 = vmatprep.subr.mxu0 %v2677_v0  ;;  %v1342_v13 = vand.u32 4294901760, %v3167_v55  ;;  %v1363_v25 = vand.u32 4294901760, %v3181_v9 }
 0x14b   :  { %2354 = vmatprep.subr.mxu1 %v2677_v0  ;;  %2312 = vmatpush3.msra.mxu0 %v719_v61  ;;  %v3172_v61 = vand.u32 4294901760, %v1227_v50 }
 0x14c   :  { %2355 = vmatpush3.msra.mxu1 %v2908_v19  ;;  %2313 = vmatprep.subr.mxu0 %v2677_v0  ;;  %v1349_v19 = vand.u32 4294901760, %v3175_v6 }
 0x14d   :  { %2356 = vmatprep.subr.mxu1 %v2677_v0  ;;  %2314 = vmatpush3.msra.mxu0 %v726_v11  ;;  %v3184_v11 = vand.u32 4294901760, %v1226_v51  ;;  %v3195_v18 = vsub.f32 %v1227_v50, %v3172_v61 }
 0x14e   :  { %2357 = vmatpush3.msra.mxu1 %v2920_v28  ;;  %2315 = vmatprep.subr.mxu0 %v2677_v0  ;;  %v1337_v28 = vand.u32 4294901760, %v1336_v12 }
 0x14f   :  { %2358 = vmatprep.subr.mxu1 %v2677_v0  ;;  %2316 = vmatpush3.msra.mxu0 %v733_v17  ;;  %v3191_v17 = vsub.f32 %v1228_v47, %v3170_v58  ;;  %v3207_v56 = vsub.f32 %v1226_v51, %v3184_v11  ;;  %v1377_v5 = vand.u32 4294901760, %v3195_v18  ;;  %v1220_v47 = vld [vmem:[#allocation7 + $0x10] sm:$0xff] }
 0x150   :  { %2359 = vmatpush3.msra.mxu1 %v2927_v44  ;;  %2317 = vmatprep.subr.mxu0 %v2677_v0  ;;  %v1343_v44 = vsub.f32 %v3167_v55, %v1342_v13 }
 0x151   :  { %2360 = vmatprep.subr.mxu1 %v2677_v0  ;;  %2318 = vmatpush3.msra.mxu0 %v3530_v16  ;;  %v1370_v48 = vand.u32 4294901760, %v3191_v17  ;;  %v1384_v52 = vand.u32 4294901760, %v3207_v56  ;;  %v1378_v60 = vsub.f32 %v3195_v18, %v1377_v5  ;;  %v1222_v16 = vld [vmem:[#allocation7 + $0x20] sm:$0xff] }
 0x152   :  { %2361 = vmatpush3.msra.mxu1 %v2940_v57  ;;  %2319 = vmatprep.subr.mxu0 %v2677_v0  ;;  %v1350_v57 = vsub.f32 %v3175_v6, %v1349_v19  ;;  %v1344_v1 = vand.u32 4294901760, %v1343_v44 }
 0x153   :  { %2362 = vmatprep.subr.mxu1 %v2677_v0  ;;  %2320 = vmatpush3.msra.mxu0 %v3531_v21  ;;  %v1371_v49 = vsub.f32 %v3191_v17, %v1370_v48  ;;  %v1385_v4 = vsub.f32 %v3207_v56, %v1384_v52  ;;  %v1379_v15 = vand.u32 4294901760, %v1378_v60  ;;  %v1392_v21 = vsub.f32 %v3245_v22, %v1391_v39 }
 0x154   :  { %2363 = vmatpush3.msra.mxu1 %v2950_v2  ;;  %2364 = vmatprep.mubr.msk.f32.mxu1 %vm2678_vm0, %v2677_v0  ;;  %v1364_v2 = vsub.f32 %v3181_v9, %v1363_v25  ;;  %v1351_v7 = vand.u32 4294901760, %v1350_v57  ;;  %v1219_v57 = vld [vmem:[#allocation7 + $0x8] sm:$0xff] }
 0x155   :  { %2321 = vmatprep.subr.mxu0 %v2677_v0  ;;  %2365 = vmatmul.mubr.f32.vlgmr.msra.gmra.mxu1 %v2983_v24  ;;  %v1372_v3 = vand.u32 4294901760, %v1371_v49  ;;  %v1386_v35 = vand.u32 4294901760, %v1385_v4  ;;  %v1393_v32 = vand.u32 4294901760, %v1392_v21  ;;  %v1218_v49 = vld [vmem:[#allocation7] sm:$0xff] }
 0x156   :  { %2322 = vmatpush3.msra.mxu0 %v3532_v26  ;;  %2329 = vmatprep.mubr.msk.f32.mxu0 %vm2678_vm0, %v2677_v0  ;;  %v1365_v53 = vand.u32 4294901760, %v1364_v2  ;;  %v1398_v26 = vand.u32 4294901760, %v3254_v59 }
 0x157   :  { %2323 = vmatprep.subr.mxu0 %v2677_v0  ;;  %2402 = vmatprep.subr.mxu1 %v2677_v0 }
 0x158   :  { %2324 = vmatpush3.msra.mxu0 %v3533_v27  ;;  %2434 = vmatprep.mubr.msk.f32.mxu1 %vm2678_vm0, %v2677_v0  ;;  %v3266_v27 = vsub.f32 %v1223_v31, %v3256_v40  ;;  %v1399_v34 = vsub.f32 %v3254_v59, %v1398_v26 }
 0x159   :  { %2325 = vmatprep.subr.mxu0 %v2677_v0  ;;  %2403 = vmatpush3.msra.mxu1 %v1337_v28  ;;  %v3289_v28 = vand.u32 4294901760, %v1220_v47 }
 0x15a   :  { %2326 = vmatpush3.msra.mxu0 %v3534_v29  ;;  %2404 = vmatprep.subr.mxu1 %v2677_v0  ;;  %v3268_v29 = vand.u32 4294901760, %v1222_v16  ;;  %v1405_v38 = vand.u32 4294901760, %v3266_v27  ;;  %v1400_v50 = vand.u32 4294901760, %v1399_v34 }
 0x15b   :  { %2327 = vmatprep.subr.mxu0 %v2677_v0  ;;  %2405 = vmatpush3.msra.mxu1 %v1344_v1  ;;  %v3300_v2 = vsub.f32 %v1220_v47, %v3289_v28 }
 0x15c   :  { %2328 = vmatpush3.msra.mxu0 %v3535_v30  ;;  %2406 = vmatprep.subr.mxu1 %v2677_v0  ;;  %v1221_v30 = vld [vmem:[#allocation7 + $0x18] sm:$0xff]  ;;  %v3278_v41 = vsub.f32 %v1222_v16, %v3268_v29  ;;  %v1406_v51 = vsub.f32 %v3266_v27, %v1405_v38 }
 0x15d   :  { %2330 = vmatmul.mubr.f32.vlgmr.msra.gmra.mxu0 %v2983_v24  ;;  %2367 = vmatprep.subr.mxu0 %v2677_v0  ;;  %v1356_v24 = vand.u32 4294901760, %v3178_v8  ;;  %v3282_v42 = vand.u32 4294901760, %v1221_v30  ;;  %v3528_v60 = vand.u32 4294901760, %v3300_v2 }
 0x15e   :  { %2399 = vmatprep.mubr.msk.f32.mxu0 %vm2678_vm0, %v2677_v0  ;;  %2368 = vmatpush3.msra.mxu0 %v3150_v33  ;;  %v1412_v12 = vand.u32 4294901760, %v3278_v41 }
 0x15f   :  { %2369 = vmatprep.subr.mxu0 %v2677_v0  ;;  %v1357_v63 = vsub.f32 %v3178_v8, %v1356_v24  ;;  %2407 = vmatpush3.msra.mxu1 %v1351_v7  ;;  %v3293_v44 = vsub.f32 %v1221_v30, %v3282_v42  ;;  %v3302_v7 = vand.u32 4294901760, %v1219_v57  ;;  %v1427_v14 = vsub.f32 %v3300_v2, %v3528_v60 }
 0x160   :  { %2370 = vmatpush3.msra.mxu0 %v3155_v37  ;;  %2408 = vmatprep.subr.mxu1 %v2677_v0  ;;  %v1413_v1 = vsub.f32 %v3278_v41, %v1412_v12 }
 0x161   :  { %2371 = vmatprep.subr.mxu0 %v2677_v0  ;;  %v1358_v20 = vand.u32 4294901760, %v1357_v63  ;;  %v1407_v63 = vand.u32 4294901760, %v1406_v51  ;;  %v3310_v62 = vsub.f32 %v1219_v57, %v3302_v7  ;;  %v1428_v16 = vand.u32 4294901760, %v1427_v14  ;;  %v1891_v14 = vld [vmem:[%s3516_s4] ss:$0 sm:$0xff] }
 0x162   :  { %2372 = vmatpush3.msra.mxu0 %v3158_v43 }
 0x163   :  { %2373 = vmatprep.subr.mxu0 %v2677_v0  ;;  %2409 = vmatpush3.msra.mxu1 %v1358_v20  ;;  %v3529_v20 = vand.u32 4294901760, %v3293_v44 }
 0x164   :  { %2374 = vmatpush3.msra.mxu0 %v3160_v45  ;;  %2410 = vmatprep.subr.mxu1 %v2677_v0 }
 0x165   :  { %2375 = vmatprep.subr.mxu0 %v2677_v0  ;;  %2411 = vmatpush3.msra.mxu1 %v1365_v53  ;;  %v1414_v53 = vand.u32 4294901760, %v1413_v1  ;;  %v1420_v4 = vsub.f32 %v3293_v44, %v3529_v20 }
 0x166   :  { %2376 = vmatpush3.msra.mxu0 %v3162_v46  ;;  %2412 = vmatprep.subr.mxu1 %v2677_v0 }
 0x167   :  { %2377 = vmatprep.subr.mxu0 %v2677_v0  ;;  %2413 = vmatpush3.msra.mxu1 %v1372_v3  ;;  %v3312_v3 = vand.u32 4294901760, %v1218_v49 }
 0x168   :  { %2378 = vmatpush3.msra.mxu0 %v3170_v58  ;;  %2414 = vmatprep.subr.mxu1 %v2677_v0 }
 0x169   :  { %2379 = vmatprep.subr.mxu0 %v2677_v0  ;;  %2415 = vmatpush3.msra.mxu1 %v1379_v15  ;;  %v3527_v15 = vand.u32 4294901760, %v3310_v62  ;;  %v3325_v31 = vsub.f32 %v1218_v49, %v3312_v3 }
 0x16a   :  { %2380 = vmatpush3.msra.mxu0 %v3172_v61  ;;  %2416 = vmatprep.subr.mxu1 %v2677_v0 }
 0x16b   :  { %2381 = vmatprep.subr.mxu0 %v2677_v0  ;;  %2417 = vmatpush3.msra.mxu1 %v1386_v35  ;;  %v1421_v35 = vand.u32 4294901760, %v1420_v4  ;;  %v1434_v21 = vsub.f32 %v3310_v62, %v3527_v15  ;;  %v3526_v30 = vand.u32 4294901760, %v3325_v31 }
 0x16c   :  { %2382 = vmatpush3.msra.mxu0 %v3184_v11  ;;  %2418 = vmatprep.subr.mxu1 %v2677_v0 }
 0x16d   :  { %2383 = vmatprep.subr.mxu0 %v2677_v0  ;;  %2419 = vmatpush3.msra.mxu1 %v1393_v32  ;;  %v1435_v32 = vand.u32 4294901760, %v1434_v21  ;;  %v1441_v34 = vsub.f32 %v3325_v31, %v3526_v30 }
 0x16e   :  { %2384 = vmatpush3.msra.mxu0 %v3239_v10  ;;  %2420 = vmatprep.subr.mxu1 %v2677_v0 }
 0x16f   :  { %2385 = vmatprep.subr.mxu0 %v2677_v0  ;;  %2421 = vmatpush3.msra.mxu1 %v1400_v50  ;;  %v1442_v47 = vand.u32 4294901760, %v1441_v34 }
 0x170   :  { %2386 = vmatpush3.msra.mxu0 %v3247_v23  ;;  %2422 = vmatprep.subr.mxu1 %v2677_v0 }
 0x171   :  { %2387 = vmatprep.subr.mxu0 %v2677_v0  ;;  %2423 = vmatpush3.msra.mxu1 %v1407_v63 }
 0x172   :  { %2388 = vmatpush3.msra.mxu0 %v3256_v40  ;;  %2424 = vmatprep.subr.mxu1 %v2677_v0 }
 0x173   :  { %2389 = vmatprep.subr.mxu0 %v2677_v0  ;;  %2425 = vmatpush3.msra.mxu1 %v1414_v53 }
 0x174   :  { %2390 = vmatpush3.msra.mxu0 %v3268_v29  ;;  %2426 = vmatprep.subr.mxu1 %v2677_v0 }
 0x175   :  { %2391 = vmatprep.subr.mxu0 %v2677_v0  ;;  %2427 = vmatpush3.msra.mxu1 %v1421_v35 }
 0x176   :  { %2392 = vmatpush3.msra.mxu0 %v3282_v42  ;;  %2428 = vmatprep.subr.mxu1 %v2677_v0 }
 0x177   :  { %2393 = vmatprep.subr.mxu0 %v2677_v0  ;;  %2429 = vmatpush3.msra.mxu1 %v1428_v16 }
 0x178   :  { %2394 = vmatpush3.msra.mxu0 %v3289_v28  ;;  %2430 = vmatprep.subr.mxu1 %v2677_v0 }
 0x179   :  { %2395 = vmatprep.subr.mxu0 %v2677_v0  ;;  %2431 = vmatpush3.msra.mxu1 %v1435_v32 }
 0x17a   :  { %2396 = vmatpush3.msra.mxu0 %v3302_v7  ;;  %2432 = vmatprep.subr.mxu1 %v2677_v0 }
 0x17b   :  { %2397 = vmatprep.subr.mxu0 %v2677_v0  ;;  %2433 = vmatpush3.msra.mxu1 %v1442_v47 }
 0x17c   :  { %2398 = vmatpush3.msra.mxu0 %v3312_v3  ;;  %2472 = vmatprep.subr.mxu1 %v2677_v0 }
 0x17d   :  { %2437 = vmatprep.subr.mxu0 %v2677_v0 }
 0x1d3   :  { %v814_v50 = vpop.f32.mrf.mxu1 }
 0x1d5   :  { %v2226_v51 = vpop.f32.mrf.mxu1 }
 0x1db   :  { %v663_v57 = vpop.f32.mrf.mxu0 }
 0x1dc   :  { %v664_v35 = vadd.f32 %v1891_v14, %v663_v57 }
 0x1dd   :  { %v2191_v63 = vpop.f32.mrf.mxu0 }
 0x1de   :  { %v815_v21 = vadd.f32 %v814_v50, %v664_v35 }
 0x1f3   :  { %v1007_v1 = vpop.f32.mrf.mxu1 }
 0x1f5   :  { %v2296_v49 = vpop.f32.mrf.mxu1 }
 0x1fc   :  { %v918_v53 = vpop.f32.mrf.mxu0 }
 0x1fd   :  { %v919_v34 = vadd.f32 %v918_v53, %v815_v21 }
 0x1fe   :  { %v2261_v4 = vpop.f32.mrf.mxu0 }
 0x1ff   :  { %v1008_v47 = vadd.f32 %v1007_v1, %v919_v34 }
 0x215   :  { %v1213_v16 = vpop.f32.mrf.mxu1 }
 0x217   :  { %v2366_v32 = vpop.f32.mrf.mxu1 }
 0x21d   :  { %v1126_v30 = vpop.f32.mrf.mxu0 }
 0x21e   :  { %v1127_v15 = vadd.f32 %v1126_v30, %v1008_v47 }
 0x21f   :  { %v2331_v60 = vpop.f32.mrf.mxu0 }
 0x220   :  { %v1214_v51 = vadd.f32 %v1213_v16, %v1127_v15 }
 0x222   :  { %v1217_v20 = vmax.f32 %v1214_v51, 0.0 }
 0x224   :  { %v3345_v63 = vand.u32 4294901760, %v1217_v20 }
 0x226   :  { %v3348_v49 = vsub.f32 %v1217_v20, %v3345_v63  ;;  %2435 = vmatmul.mubr.f32.vlgmr.msra.gmra.mxu1 %v3345_v63 }
 0x227   :  { %2473 = vmatpush3.msra.mxu1 %v3150_v33  ;;  %2504 = vmatprep.mubr.msk.f32.mxu1 %vm2678_vm0, %v2677_v0 }
 0x228   :  { %v1324_v50 = vand.u32 4294901760, %v3348_v49  ;;  %2474 = vmatprep.subr.mxu1 %v2677_v0 }
 0x229   :  { %2475 = vmatpush3.msra.mxu1 %v3155_v37 }
 0x22a   :  { %2476 = vmatprep.subr.mxu1 %v2677_v0  ;;  %v1325_v60 = vsub.f32 %v3348_v49, %v1324_v50 }
 0x22b   :  { %2477 = vmatpush3.msra.mxu1 %v3158_v43 }
 0x22c   :  { %2478 = vmatprep.subr.mxu1 %v2677_v0  ;;  %v1326_v20 = vand.u32 4294901760, %v1325_v60 }
 0x22d   :  { %2479 = vmatpush3.msra.mxu1 %v3160_v45 }
 0x22e   :  { %2480 = vmatprep.subr.mxu1 %v2677_v0  ;;  %2400 = vmatmul.mubr.f32.vlgmr.msra.gmra.mxu0 %v1326_v20 }
 0x22f   :  { %2438 = vmatpush3.msra.mxu0 %v3153_v36  ;;  %2481 = vmatpush3.msra.mxu1 %v3162_v46  ;;  %v3537_v36 = vand.u32 4294901760, %v3300_v2 }
 0x230   :  { %2439 = vmatprep.subr.mxu0 %v2677_v0  ;;  %2482 = vmatprep.subr.mxu1 %v2677_v0 }
 0x231   :  { %2440 = vmatpush3.msra.mxu0 %v3167_v55  ;;  %2483 = vmatpush3.msra.mxu1 %v3170_v58 }
 0x232   :  { %2441 = vmatprep.subr.mxu0 %v2677_v0  ;;  %2484 = vmatprep.subr.mxu1 %v2677_v0 }
 0x233   :  { %2442 = vmatpush3.msra.mxu0 %v3175_v6  ;;  %2485 = vmatpush3.msra.mxu1 %v3172_v61 }
 0x234   :  { %2443 = vmatprep.subr.mxu0 %v2677_v0  ;;  %2486 = vmatprep.subr.mxu1 %v2677_v0 }
 0x235   :  { %2444 = vmatpush3.msra.mxu0 %v3178_v8  ;;  %2487 = vmatpush3.msra.mxu1 %v3184_v11 }
 0x236   :  { %2445 = vmatprep.subr.mxu0 %v2677_v0  ;;  %2488 = vmatprep.subr.mxu1 %v2677_v0 }
 0x237   :  { %2446 = vmatpush3.msra.mxu0 %v3181_v9  ;;  %2489 = vmatpush3.msra.mxu1 %v3239_v10  ;;  %v1892_v9 = vld [vmem:[%s3518_s6] ss:$0 sm:$0xff] }
 0x238   :  { %2447 = vmatprep.subr.mxu0 %v2677_v0  ;;  %2490 = vmatprep.subr.mxu1 %v2677_v0 }
 0x239   :  { %2448 = vmatpush3.msra.mxu0 %v3191_v17  ;;  %2491 = vmatpush3.msra.mxu1 %v3247_v23 }
 0x23a   :  { %2449 = vmatprep.subr.mxu0 %v2677_v0  ;;  %2492 = vmatprep.subr.mxu1 %v2677_v0 }
 0x23b   :  { %2450 = vmatpush3.msra.mxu0 %v3195_v18  ;;  %2493 = vmatpush3.msra.mxu1 %v3256_v40 }
 0x23c   :  { %2451 = vmatprep.subr.mxu0 %v2677_v0  ;;  %2494 = vmatprep.subr.mxu1 %v2677_v0 }
 0x23d   :  { %2452 = vmatpush3.msra.mxu0 %v3207_v56  ;;  %2495 = vmatpush3.msra.mxu1 %v3268_v29 }
 0x23e   :  { %2453 = vmatprep.subr.mxu0 %v2677_v0  ;;  %2496 = vmatprep.subr.mxu1 %v2677_v0 }
 0x23f   :  { %2454 = vmatpush3.msra.mxu0 %v3245_v22  ;;  %2497 = vmatpush3.msra.mxu1 %v3282_v42 }
 0x240   :  { %2455 = vmatprep.subr.mxu0 %v2677_v0  ;;  %2498 = vmatprep.subr.mxu1 %v2677_v0 }
 0x241   :  { %2456 = vmatpush3.msra.mxu0 %v3254_v59  ;;  %2499 = vmatpush3.msra.mxu1 %v3289_v28 }
 0x242   :  { %2457 = vmatprep.subr.mxu0 %v2677_v0  ;;  %2500 = vmatprep.subr.mxu1 %v2677_v0 }
 0x243   :  { %2458 = vmatpush3.msra.mxu0 %v3266_v27  ;;  %2501 = vmatpush3.msra.mxu1 %v3302_v7 }
 0x244   :  { %2459 = vmatprep.subr.mxu0 %v2677_v0  ;;  %2502 = vmatprep.subr.mxu1 %v2677_v0 }
 0x245   :  { %2460 = vmatpush3.msra.mxu0 %v3278_v41  ;;  %2503 = vmatpush3.msra.mxu1 %v3312_v3 }
 0x246   :  { %2461 = vmatprep.subr.mxu0 %v2677_v0  ;;  %2505 = vmatmul.mubr.f32.vlgmr.msra.gmra.mxu1 %v1324_v50 }
 0x247   :  { %2542 = vmatprep.subr.mxu1 %v2677_v0  ;;  %2462 = vmatpush3.msra.mxu0 %v3293_v44 }
 0x248   :  { %2543 = vmatpush3.msra.mxu1 %v3150_v33  ;;  %2463 = vmatprep.subr.mxu0 %v2677_v0  ;;  %v3536_v33 = vand.u32 4294901760, %v3293_v44 }
 0x249   :  { %2544 = vmatprep.subr.mxu1 %v2677_v0  ;;  %2464 = vmatpush3.msra.mxu0 %v3300_v2 }
 0x24a   :  { %2545 = vmatpush3.msra.mxu1 %v3155_v37  ;;  %2465 = vmatprep.subr.mxu0 %v2677_v0  ;;  %v3538_v37 = vand.u32 4294901760, %v3310_v62 }
 0x24b   :  { %2546 = vmatprep.subr.mxu1 %v2677_v0  ;;  %2466 = vmatpush3.msra.mxu0 %v3310_v62 }
 0x24c   :  { %2547 = vmatpush3.msra.mxu1 %v3158_v43  ;;  %2467 = vmatprep.subr.mxu0 %v2677_v0  ;;  %v3539_v43 = vand.u32 4294901760, %v3325_v31 }
 0x24d   :  { %2548 = vmatprep.subr.mxu1 %v2677_v0  ;;  %2468 = vmatpush3.msra.mxu0 %v3325_v31 }
 0x24e   :  { %2469 = vmatprep.mubr.msk.f32.mxu0 %vm2678_vm0, %v2677_v0  ;;  %2549 = vmatpush3.msra.mxu1 %v3160_v45 }
 0x24f   :  { %2470 = vmatmul.mubr.f32.vlgmr.msra.gmra.mxu0 %v3348_v49  ;;  %2507 = vmatprep.subr.mxu0 %v2677_v0 }
 0x250   :  { %2550 = vmatprep.subr.mxu1 %v2677_v0  ;;  %2508 = vmatpush3.msra.mxu0 %v1335_v54 }
 0x251   :  { %2551 = vmatpush3.msra.mxu1 %v3162_v46  ;;  %2509 = vmatprep.subr.mxu0 %v2677_v0 }
 0x252   :  { %2552 = vmatprep.subr.mxu1 %v2677_v0  ;;  %2510 = vmatpush3.msra.mxu0 %v1342_v13 }
 0x253   :  { %2553 = vmatpush3.msra.mxu1 %v3170_v58  ;;  %2511 = vmatprep.subr.mxu0 %v2677_v0 }
 0x254   :  { %2554 = vmatprep.subr.mxu1 %v2677_v0  ;;  %2512 = vmatpush3.msra.mxu0 %v1349_v19 }
 0x255   :  { %2555 = vmatpush3.msra.mxu1 %v3172_v61  ;;  %2513 = vmatprep.subr.mxu0 %v2677_v0 }
 0x256   :  { %2556 = vmatprep.subr.mxu1 %v2677_v0  ;;  %2514 = vmatpush3.msra.mxu0 %v1356_v24 }
 0x257   :  { %2557 = vmatpush3.msra.mxu1 %v3184_v11  ;;  %2515 = vmatprep.subr.mxu0 %v2677_v0 }
 0x258   :  { %2558 = vmatprep.subr.mxu1 %v2677_v0  ;;  %2516 = vmatpush3.msra.mxu0 %v1363_v25 }
 0x259   :  { %2559 = vmatpush3.msra.mxu1 %v3239_v10  ;;  %2517 = vmatprep.subr.mxu0 %v2677_v0 }
 0x25a   :  { %2560 = vmatprep.subr.mxu1 %v2677_v0  ;;  %2518 = vmatpush3.msra.mxu0 %v1370_v48 }
 0x25b   :  { %2561 = vmatpush3.msra.mxu1 %v3247_v23  ;;  %2519 = vmatprep.subr.mxu0 %v2677_v0 }
 0x25c   :  { %2562 = vmatprep.subr.mxu1 %v2677_v0  ;;  %2520 = vmatpush3.msra.mxu0 %v1377_v5 }
 0x25d   :  { %2563 = vmatpush3.msra.mxu1 %v3256_v40  ;;  %2521 = vmatprep.subr.mxu0 %v2677_v0 }
 0x25e   :  { %2564 = vmatprep.subr.mxu1 %v2677_v0  ;;  %2522 = vmatpush3.msra.mxu0 %v1384_v52 }
 0x25f   :  { %2565 = vmatpush3.msra.mxu1 %v3268_v29  ;;  %2523 = vmatprep.subr.mxu0 %v2677_v0 }
 0x260   :  { %2566 = vmatprep.subr.mxu1 %v2677_v0  ;;  %2524 = vmatpush3.msra.mxu0 %v1391_v39 }
 0x261   :  { %2567 = vmatpush3.msra.mxu1 %v3282_v42  ;;  %2525 = vmatprep.subr.mxu0 %v2677_v0 }
 0x262   :  { %2568 = vmatprep.subr.mxu1 %v2677_v0  ;;  %2526 = vmatpush3.msra.mxu0 %v1398_v26 }
 0x263   :  { %2569 = vmatpush3.msra.mxu1 %v3289_v28  ;;  %2527 = vmatprep.subr.mxu0 %v2677_v0 }
 0x264   :  { %2570 = vmatprep.subr.mxu1 %v2677_v0  ;;  %2528 = vmatpush3.msra.mxu0 %v1405_v38 }
 0x265   :  { %2571 = vmatpush3.msra.mxu1 %v3302_v7  ;;  %2529 = vmatprep.subr.mxu0 %v2677_v0 }
 0x266   :  { %2572 = vmatprep.subr.mxu1 %v2677_v0  ;;  %2530 = vmatpush3.msra.mxu0 %v1412_v12 }
 0x267   :  { %2573 = vmatpush3.msra.mxu1 %v3312_v3  ;;  %2574 = vmatprep.mubr.msk.f32.mxu1 %vm2678_vm0, %v2677_v0 }
 0x268   :  { %2531 = vmatprep.subr.mxu0 %v2677_v0  ;;  %2575 = vmatmul.mubr.f32.vlgmr.msra.gmra.mxu1 %v3345_v63 }
 0x269   :  { %2532 = vmatpush3.msra.mxu0 %v3536_v33  ;;  %2539 = vmatprep.mubr.msk.f32.mxu0 %vm2678_vm0, %v2677_v0 }
 0x26a   :  { %2533 = vmatprep.subr.mxu0 %v2677_v0 }
 0x26b   :  { %2534 = vmatpush3.msra.mxu0 %v3537_v36 }
 0x26c   :  { %2535 = vmatprep.subr.mxu0 %v2677_v0 }
 0x26d   :  { %2536 = vmatpush3.msra.mxu0 %v3538_v37 }
 0x26e   :  { %2537 = vmatprep.subr.mxu0 %v2677_v0 }
 0x26f   :  { %2538 = vmatpush3.msra.mxu0 %v3539_v43 }
 0x270   :  { %2540 = vmatmul.mubr.f32.vlgmr.msra.gmra.mxu0 %v3345_v63 }
 0x2e6   :  { %v1479_v45 = vpop.f32.mrf.mxu1 }
 0x2e8   :  { %v2436_v46 = vpop.f32.mrf.mxu1 }
 0x2ee   :  { %v1328_v54 = vpop.f32.mrf.mxu0 }
 0x2ef   :  { %v1329_v11 = vadd.f32 %v1892_v9, %v1328_v54 }
 0x2f0   :  { %v2401_v55 = vpop.f32.mrf.mxu0 }
 0x2f1   :  { %v1480_v0 = vadd.f32 %v1479_v45, %v1329_v11 }
 0x306   :  { %v1672_v58 = vpop.f32.mrf.mxu1 }
 0x308   :  { %v2506_v61 = vpop.f32.mrf.mxu1 }
 0x30f   :  { %v1583_v6 = vpop.f32.mrf.mxu0 }
 0x310   :  { %v1584_v18 = vadd.f32 %v1583_v6, %v1480_v0 }
 0x311   :  { %v2471_v8 = vpop.f32.mrf.mxu0 }
 0x312   :  { %v1673_v19 = vadd.f32 %v1672_v58, %v1584_v18 }
 0x328   :  { %v1878_v13 = vpop.f32.mrf.mxu1 }
 0x32a   :  { %v2576_v17 = vpop.f32.mrf.mxu1 }
 0x330   :  { %v1791_v24 = vpop.f32.mrf.mxu0 }
 0x331   :  { %v1792_v25 = vadd.f32 %v1791_v24, %v1673_v19 }
 0x332   :  { %v2541_v48 = vpop.f32.mrf.mxu0 }
 0x333   :  { %v1879_v56 = vadd.f32 %v1878_v13, %v1792_v25 }
 0x335   :  { %1882 = vst [vmem:[%s3519_s7] sm:$0xff] %v1879_v56 }
 0x336   :  { %1887 = vsyncpa [#allocation3], 1 }
 0x337   :  { %1888 = vsyncpa [#allocation5], 1 }
 0x338   :  { %1889 = vsyncpa [#allocation8], 1 }

</bundles_post_ra>
